<compile_context>
chip_gen: v7x
topology: tpu7x:2x2x1
jax: 0.10.0
libtpu: 0.0.40
codegen_flags: <defaults>
</compile_context>

<pallas_src>
import functools

import jax
import jax.numpy as jnp
from jax import lax
from jax.experimental import pallas as pl
from jax.experimental.pallas import tpu as pltpu

n_embd = 384        # from the module
block_size = 256    # causal-mask context length from the module
DROPOUT_P = 0.2     # eval-mode identity here

MASK_VALUE = -1e30  # large finite negative instead of -inf (NaN-safe masking)


# --------------------------- projection kernels -----------------------------

def qkv_proj_kernel(x_ref, w_ref, o_ref):
    # x_ref: (1, tm, C) bf16 ; w_ref: (C, 3C) bf16 ; o_ref: (1, tm, 3C) bf16
    y = jnp.dot(x_ref[0], w_ref[...], preferred_element_type=jnp.float32)
    o_ref[0] = y.astype(o_ref.dtype)


def out_proj_kernel(x_ref, w_ref, b_ref, o_ref):
    # x_ref: (1, tm, C) bf16 ; w_ref: (C, C) bf16 ; b_ref: (1, C) f32
    y = jnp.dot(x_ref[0], w_ref[...], preferred_element_type=jnp.float32)
    o_ref[0] = (y + b_ref[...]).astype(o_ref.dtype)


def qkv_projection(x_bf16, w_qkv_bf16, *, tm):
    B, T, C = x_bf16.shape
    N = w_qkv_bf16.shape[1]
    return pl.pallas_call(
        qkv_proj_kernel,
        out_shape=jax.ShapeDtypeStruct((B, T, N), jnp.bfloat16),
        grid_spec=pltpu.PrefetchScalarGridSpec(
            num_scalar_prefetch=0,
            grid=(B, T // tm),
            in_specs=[
                pl.BlockSpec((1, tm, C), lambda b, i: (b, i, 0)),
                pl.BlockSpec((C, N), lambda b, i: (0, 0)),
            ],
            out_specs=pl.BlockSpec((1, tm, N), lambda b, i: (b, i, 0)),
        ),
        compiler_params=pltpu.CompilerParams(
            dimension_semantics=("parallel", "parallel")),
    )(x_bf16, w_qkv_bf16)


def output_projection(attn_bf16, w_proj_bf16, b_proj_2d, *, tm):
    B, T, C = attn_bf16.shape
    return pl.pallas_call(
        out_proj_kernel,
        out_shape=jax.ShapeDtypeStruct((B, T, C), jnp.float32),
        grid_spec=pltpu.PrefetchScalarGridSpec(
            num_scalar_prefetch=0,
            grid=(B, T // tm),
            in_specs=[
                pl.BlockSpec((1, tm, C), lambda b, i: (b, i, 0)),
                pl.BlockSpec((C, C), lambda b, i: (0, 0)),
                pl.BlockSpec((1, C), lambda b, i: (0, 0)),
            ],
            out_specs=pl.BlockSpec((1, tm, C), lambda b, i: (b, i, 0)),
        ),
        compiler_params=pltpu.CompilerParams(
            dimension_semantics=("parallel", "parallel")),
    )(attn_bf16, w_proj_bf16, b_proj_2d)


# ------------------------- flash attention kernel ---------------------------

def flash_attn_kernel(q_ref, k_ref, v_ref, o_ref, m_s, l_s, acc_s, *, tq, tk):
    qi = pl.program_id(1)
    ki = pl.program_id(2)
    q_start = qi * tq
    kv_start = ki * tk

    @pl.when(ki == 0)
    def _init():
        m_s[...] = jnp.full(m_s.shape, MASK_VALUE, dtype=m_s.dtype)
        l_s[...] = jnp.zeros(l_s.shape, dtype=l_s.dtype)
        acc_s[...] = jnp.zeros(acc_s.shape, dtype=acc_s.dtype)

    def _step(apply_mask):
        q = q_ref[0]                       # (tq, H) bf16
        k = k_ref[0]                       # (tk, H) bf16
        # Contract last dims directly -> no explicit k.T / XLU transpose.
        # NOTE: no 1/sqrt(head_size) scaling, matching the reference module.
        s = lax.dot_general(q, k, (((1,), (1,)), ((), ())),
                            preferred_element_type=jnp.float32)   # (tq, tk) f32
        if apply_mask:   # only materialize the iota mask on diagonal tiles
            row = q_start + lax.broadcasted_iota(jnp.int32, (tq, tk), 0)
            col = kv_start + lax.broadcasted_iota(jnp.int32, (tq, tk), 1)
            s = jnp.where(col <= row, s, MASK_VALUE)
        m_prev = m_s[...]
        m_new = jnp.maximum(m_prev, jnp.max(s, axis=-1, keepdims=True))
        alpha = jnp.exp(m_prev - m_new)                    # f32 VPU/EUP math
        p = jnp.exp(s - m_new)
        l_s[...] = alpha * l_s[...] + jnp.sum(p, axis=-1, keepdims=True)
        acc_s[...] = alpha * acc_s[...] + jnp.dot(
            p.astype(v_ref.dtype), v_ref[0], preferred_element_type=jnp.float32)
        m_s[...] = m_new

    visible = kv_start <= q_start + (tq - 1)    # tile not fully above diagonal
    diagonal = kv_start + (tk - 1) > q_start    # tile straddles the diagonal

    @pl.when(jnp.logical_and(visible, diagonal))
    def _masked_tile():
        _step(True)

    @pl.when(jnp.logical_and(visible, jnp.logical_not(diagonal)))
    def _full_tile():
        _step(False)

    @pl.when(ki == pl.num_programs(2) - 1)
    def _finalize():
        inv_l = pl.reciprocal(l_s[...], approx=True)
        o_ref[0] = (acc_s[...] * inv_l).astype(o_ref.dtype)
        # TODO(synk): attention-weight dropout (p=0.2) is identity in eval mode;
        # a training version would use pltpu.prng_seed + pltpu.stateful_bernoulli.


def flash_attention(q, k, v, *, tq, tk):
    """q, k, v: (B*num_heads, T, head_size) bf16 -> (B*num_heads, T, head_size) bf16."""
    BH, T, H = q.shape
    kernel = functools.partial(flash_attn_kernel, tq=tq, tk=tk)
    return pl.pallas_call(
        kernel,
        out_shape=jax.ShapeDtypeStruct((BH, T, H), jnp.bfloat16),
        grid_spec=pltpu.PrefetchScalarGridSpec(
            num_scalar_prefetch=0,
            grid=(BH, T // tq, T // tk),
            in_specs=[
                pl.BlockSpec((1, tq, H), lambda bh, qi, ki: (bh, qi, 0)),
                pl.BlockSpec((1, tk, H), lambda bh, qi, ki: (bh, ki, 0)),
                pl.BlockSpec((1, tk, H), lambda bh, qi, ki: (bh, ki, 0)),
            ],
            out_specs=pl.BlockSpec((1, tq, H), lambda bh, qi, ki: (bh, qi, 0)),
            scratch_shapes=[
                pltpu.VMEM((tq, 1), jnp.float32),   # m (running max)
                pltpu.VMEM((tq, 1), jnp.float32),   # l (running denom)
                pltpu.VMEM((tq, H), jnp.float32),   # acc
            ],
        ),
        compiler_params=pltpu.CompilerParams(
            dimension_semantics=("parallel", "parallel", "arbitrary")),
    )(q, k, v)


# ------------------------------ full forward ---------------------------------

def multi_head_attention_forward(x, w_qkv_t, w_proj_t, b_proj, *,
                                 num_heads, head_size):
    """x: (B, T, C) f32; w_qkv_t: (C, 3C) = [Q|K|V] (head-major cols, transposed);
    w_proj_t: (C, C) transposed; b_proj: (C,). Returns (B, T, C) f32."""
    B, T, C = x.shape
    assert num_heads * head_size == C
    assert T % 8 == 0 and T <= block_size
    tm = T if T <= 256 else 256
    tq = tk = T if T <= 128 else 128
    if T > 256:
        assert T % 256 == 0
    if T > 128:
        assert T % 128 == 0

    # bf16 MXU operands, f32 accumulation everywhere.
    x_bf16 = x.astype(jnp.bfloat16)
    w_qkv_bf16 = w_qkv_t.astype(jnp.bfloat16)
    w_proj_bf16 = w_proj_t.astype(jnp.bfloat16)

    qkv = qkv_projection(x_bf16, w_qkv_bf16, tm=tm)          # (B, T, 3C) bf16
    q, k, v = jnp.split(qkv, 3, axis=-1)                     # each (B, T, C)

    def to_heads(t):  # (B, T, C) -> (B*num_heads, T, head_size)
        return (t.reshape(B, T, num_heads, head_size)
                 .transpose(0, 2, 1, 3)
                 .reshape(B * num_heads, T, head_size))

    attn = flash_attention(to_heads(q), to_heads(k), to_heads(v), tq=tq, tk=tk)
    attn = (attn.reshape(B, num_heads, T, head_size)
                .transpose(0, 2, 1, 3)
                .reshape(B, T, C))                           # concat heads (bf16)

    # TODO(synk): dropout on the concatenated heads (p=0.2) is identity in eval mode.
    return output_projection(attn, w_proj_bf16, b_proj.reshape(1, C), tm=tm)


# ------------------------------- reference -----------------------------------

def multi_head_attention_reference(x, w_qkv_t, w_proj_t, b_proj, *,
                                    num_heads, head_size):
    B, T, C = x.shape
    wq, wk, wv = w_qkv_t[:, :C], w_qkv_t[:, C:2 * C], w_qkv_t[:, 2 * C:]
    mask = jnp.tril(jnp.ones((T, T), dtype=bool))
    heads = []
    for h in range(num_heads):
        sl = slice(h * head_size, (h + 1) * head_size)
        q = x @ wq[:, sl]
        k = x @ wk[:, sl]
        v = x @ wv[:, sl]
        s = jnp.einsum("btd,bsd->bts", q, k)          # no 1/sqrt(head_size) scale
        s = jnp.where(mask[None], s, -jnp.inf)
        w = jax.nn.softmax(s, axis=-1)
        heads.append(jnp.einsum("bts,bsd->btd", w, v))
    out = jnp.concatenate(heads, axis=-1)
    return out @ w_proj_t + b_proj[None, None, :]


if __name__ == "__main__":
    num_heads, head_size = 6, 64          # 6 * 64 == n_embd
    B, T = 2, 8
    key = jax.random.PRNGKey(0)
    kx, kw, kp, kb = jax.random.split(key, 4)

    x = jax.random.normal(kx, (B, T, n_embd), dtype=jnp.float32)

    # Deterministic nn.Linear-style uniform init, stored pre-transposed.
    bound = 1.0 / (n_embd ** 0.5)
    w_qkv_t = jax.random.uniform(kw, (n_embd, 3 * n_embd), jnp.float32, -bound, bound)
    w_proj_t = jax.random.uniform(kp, (n_embd, n_embd), jnp.float32, -bound, bound)
    b_proj = jax.random.uniform(kb, (n_embd,), jnp.float32, -bound, bound)

    out = multi_head_attention_forward(x, w_qkv_t, w_proj_t, b_proj,
                                       num_heads=num_heads, head_size=head_size)
    out = jax.block_until_ready(out)

    ref = multi_head_attention_reference(x, w_qkv_t, w_proj_t, b_proj,
                                         num_heads=num_heads, head_size=head_size)
    assert out.shape == (B, T, n_embd)
    max_err = jnp.max(jnp.abs(out - ref))
    # bf16 MXU operands (f32 accumulation) vs pure-f32 reference -> loose tol.
    assert jnp.allclose(out, ref, atol=5e-2, rtol=5e-2), f"mismatch, max abs err {max_err}"

    print("KERNEL_OK")
</pallas_src>

<mosaic_0001>
module attributes {stable_mosaic.version = 11 : i64} {
  func.func @qkv_proj_kernel(%arg0: i32, %arg1: i32, %arg2: memref<1x8x384xbf16, #tpu.memory_space<vmem>>, %arg3: memref<384x1152xbf16, #tpu.memory_space<vmem>>, %arg4: memref<1x8x1152xbf16, #tpu.memory_space<vmem>>) attributes {dimension_semantics = [#tpu.dimension_semantics<parallel>, #tpu.dimension_semantics<parallel>], iteration_bounds = array<i64: 2, 1>, scalar_prefetch = 0 : i64, scratch_operands = 0 : i64, tpu.core_type = #tpu.core_type<tc>, window_params = [{transform_indices = @transform_0, window_bounds = array<i64: 1, 8, 384>}, {pipeline_mode = #tpu.pipeline_mode<synchronous>, transform_indices = @transform_1, window_bounds = array<i64: 384, 1152>}, {transform_indices = @transform_2, window_bounds = array<i64: 1, 8, 1152>}]} {
    %c0 = arith.constant 0 : index
    %c0_0 = arith.constant 0 : index
    %c0_1 = arith.constant 0 : index
    %0 = vector.load %arg2[%c0, %c0_0, %c0_1] : memref<1x8x384xbf16, #tpu.memory_space<vmem>>, vector<1x8x384xbf16>
    %1 = vector.shape_cast %0 : vector<1x8x384xbf16> to vector<8x384xbf16>
    %c0_2 = arith.constant 0 : index
    %c0_3 = arith.constant 0 : index
    %2 = vector.load %arg3[%c0_2, %c0_3] : memref<384x1152xbf16, #tpu.memory_space<vmem>>, vector<384x1152xbf16>
    %cst = arith.constant dense<0.000000e+00> : vector<8x1152xf32>
    %3 = tpu.matmul %1, %2, %cst {dimension_numbers = #tpu.dot_dimension_numbers<[1], [0], [0], [1], [0, 0, 1, 1], [], []>} : vector<8x384xbf16>, vector<384x1152xbf16>, vector<8x1152xf32> -> vector<8x1152xf32>
    %4 = arith.truncf %3 : vector<8x1152xf32> to vector<8x1152xbf16>
    %c0_4 = arith.constant 0 : index
    %c0_5 = arith.constant 0 : index
    %c0_6 = arith.constant 0 : index
    %5 = vector.load %arg4[%c0_4, %c0_5, %c0_6] : memref<1x8x1152xbf16, #tpu.memory_space<vmem>>, vector<1x8x1152xbf16>
    %6 = vector.shape_cast %5 : vector<1x8x1152xbf16> to vector<8x1152xbf16>
    %7 = vector.shape_cast %4 : vector<8x1152xbf16> to vector<1x8x1152xbf16>
    tpu.vector_store %arg4[%c0_4, %c0_5, %c0_6], %7 {strides = array<i32>} : memref<1x8x1152xbf16, #tpu.memory_space<vmem>>, vector<1x8x1152xbf16>,
    return
  }
  func.func @transform_0(%arg0: i32, %arg1: i32) -> (i32, i32, i32) {
    %c0_i32 = arith.constant 0 : i32
    %c0_i32_0 = arith.constant 0 : i32
    return %arg0, %arg1, %c0_i32 : i32, i32, i32
  }
  func.func @transform_1(%arg0: i32, %arg1: i32) -> (i32, i32) {
    %c0_i32 = arith.constant 0 : i32
    %c0_i32_0 = arith.constant 0 : i32
    %c0_i32_1 = arith.constant 0 : i32
    return %c0_i32, %c0_i32_0 : i32, i32
  }
  func.func @transform_2(%arg0: i32, %arg1: i32) -> (i32, i32, i32) {
    %c0_i32 = arith.constant 0 : i32
    %c0_i32_0 = arith.constant 0 : i32
    return %arg0, %arg1, %c0_i32 : i32, i32, i32
  }
}

</mosaic_0001>

<bundles_post_ra>
// kernel: tpu_custom_call.1
= control target key start
LH: loop header
LB: loop body
LE: loop exit
PB: predicated region body
PF: predicated region fallthrough
CT: control target
= control target key end

     0   :  { %7 = vsyncpa [#allocation3], 0  ;;  %s3232_s0 = inlined_call_operand.hbm [shape: bf16[2,8,384], index: 0, kind: input, shape index: {}]   ;;  %s3233_s1 = inlined_call_operand.hbm [shape: bf16[384,1152], index: 1, kind: input, shape index: {}]   ;;  %s3234_s2 = inlined_call_operand.hbm [shape: bf16[2,8,1152], index: 2, kind: output, shape index: {}]  }
   0x1   :  { %9 = vsyncpa [#allocation3 + $0x1], 0 }
   0x2   :  { %10 = vsyncpa [#allocation6], 0 }
   0x3   :  { %11 = vsyncpa [#allocation4], 0 }
   0x4   :  { %13 = vsyncpa [#allocation4 + $0x1], 0  ;;  %s2986_s9 = smov 0   ;;  %s2988_s10 = smov 0  }
   0x5   :  { %s2990_s11 = smov 0   ;;  %s2992_s12 = smov 0  }
   0x6   :  { %s2994_s13 = smov 0   ;;  %s2996_s14 = smov 0  }
   0x7 LB: > { %s2112_s15 = sadd.s32 4294967295, %s2961_s14   ;;  %s2113_s16 = sadd.s32 4294967294, %s2961_s14   ;;  %s2961_s14 = sphi %s2996_s14, %s19_s14   ;;  %s2957_s13 = sphi %s2994_s13, %s3257_s13   ;;  %s2953_s12 = sphi %s2992_s12, %s3256_s12   ;;  %s2949_s11 = sphi %s2990_s11, %s3255_s11   ;;  %s2945_s10 = sphi %s2988_s10, %s3254_s10   ;;  %s2941_s9 = sphi %s2986_s9, %s3253_s9  }
   0x8   : > { %p53_p0 = scmp.ne.s32.totalorder %s2945_s10, %s2941_s9  ;;  %p3020_p1 = scmp.eq.s32.totalorder %s2112_s15, 0 }
   0x9   : > { %p3024_p2 = scmp.eq.s32.totalorder %s2112_s15, 1  ;;  %p106_p3 = scmp.eq.s32.totalorder %s2113_s16, 1 }
   0xa   : > { %s3239_s17 = scalar_select %p3020_p1, 1, 0 }
   0xb   : > { %s3240_s18 = scalar_select %p3024_p2, 1, 0 }
   0xc   : > { %p3030_p4 = por %p3020_p1, %p53_p0  ;;  %p2114_p5 = scmp.ge.s32.totalorder %s2961_s14, 1 }
   0xd   : > { %p3035_p6 = por %p106_p3, %p53_p0  ;;  %p113_p7 = scmp.lt.s32.totalorder %s2961_s14, 3 }
   0xe   : > { %s3241_s19 = scalar_select %p3030_p4, 1, 0 }
   0xf   : > { %s3242_s20 = scalar_select %p3035_p6, 1, 0 }
  0x10   : > { %p3040_p8 = pnand %p2114_p5, %p113_p7  ;;  %s2963_s22 = smov [#allocation5]  }
  0x11   : > { %s125_s23 = sshll.u32 %s2963_s22, 4  ;;  %s31_s25 = sadd.s32 1, %s2957_s13  ;;  %s126_s23 = int_to_ptr.vmem [resolvable:$true] %s125_s23 }
  0x12   : > { %s3243_s21 = scalar_select %p3040_p8, 1, 0 }
  0x13   : > { %p2432_p9 = pneg %p3040_p8  ;;  %s2817_s28 = scalar_lea.hbm %s3233_s1, 27648 }
  0x14   : > { %p2818_p12 = scmp.ne.s32.totalorder %s3233_s1, %s2817_s28  ;;  %p2824_p5 = scmp.lt.u32.totalorder %s2817_s28, %s3233_s1 }
  0x15   : > { %p3049_p11 = pnand %p2432_p9, %p3020_p1 }
  0x17   : > { %p2819_p13 = pneg %p3049_p11 }
  0x19   : > { %p2820_p0 = pnand %p2819_p13, %p2818_p12 }
  0x1b   : > { %p2821_p3 = pneg %p2820_p0 }
  0x1d   : > { %p2826_p7 = pnand %p2824_p5, %p2821_p3 }
  0x1f   : > { %2829 = shalt.err (!%p2826_p7)
}
  0x20   : > { %s2830_s5 = scalar_lea.vmem %s126_s23, 27648  ;;  %p2838_p1 = scmp.lt.s32.totalorder %s126_s23, %s126_s23 }
  0x21   : > { %p2831_p9 = scmp.ne.s32.totalorder %s126_s23, %s2830_s5  ;;  %p2839_p4 = scmp.lt.s32.totalorder %s2830_s5, %s2830_s5 }
  0x23   : > { %p2833_p10 = pnand %p2831_p9, %p2819_p13  ;;  %p2840_p8 = por %p2839_p4, %p2838_p1 }
  0x25   : > { %p2834_p6 = pneg %p2833_p10 }
  0x27   : > { %p2841_p2 = pnand %p2840_p8, %p2834_p6 }
  0x29   : > { %2844 = shalt.err (!%p2841_p2)
}
  0x2a   : > { %s2964_s6 = smov 576   ;;  %s2965_s7 = smov 36  }
  0x2b   : > { %2435 = dma.hbm_to_vmem [thread:$0]  (!%p3049_p11), %s3233_s1, 27648, %s126_s23, [#allocation6], %s2964_s6, %s2964_s6, %s2965_s7  }
  0x2c   : > { %p33_p1 = scmp.ge.s32.totalorder %s31_s25, 2  ;;  %s40_s16 = sadd.s32 1, %s2949_s11 }
  0x2d   : > { %p47_p2 = scmp.ne.s32.totalorder %s2949_s11, %s2945_s10  ;;  %p48_p4 = scmp.eq.s32.totalorder %s2961_s14, 0 }
  0x2e   : > { %s3259_s25 = smov (%p33_p1, %s31_s25), 0  ;;  %p3245_p8 = scmp.ne.s32.totalorder %s3240_s18, 0 }
  0x2f   : > { %p49_p6 = por %p48_p4, %p47_p2  ;;  %s35_s26 = ssub.s32 %s2957_s13, %s3259_s25 }
  0x30   : > { %p3078_p10 = por %p3245_p8, %p47_p2  ;;  %p2445_p12 = scmp.lt.s32.totalorder %s2961_s14, 2 }
  0x31   : > { %p38_p13 = scmp.eq.s32.totalorder %s35_s26, 0  ;;  %s139_s24 = sand.u32 1, %s2949_s11  }
  0x32   : > { %s2419_s27 = smul.u32 12, %s139_s24  ;;  %p3090_p11 = pnand %p2445_p12, %p49_p6 }
  0x33   : > { %s3087_s28 = scalar_select %p38_p13, %s2949_s11, %s40_s16  }
  0x34   : > { %s2420_s23 = smul.u32 192, %s2957_s13  ;;  %s143_s29 = scalar_lea.vmem [#allocation2], %s2419_s27 }
  0x35   : > { %s153_s30 = sshll.u32 %s143_s29, 4  ;;  %s140_s6 = scalar_lea.sflag [#allocation3], %s139_s24  ;;  %s3099_s30 = int_to_ptr.vmem [resolvable:$true] %s153_s30 }
  0x36   : > { %s3097_s5 = scalar_lea.hbm %s3232_s0, %s2420_s23  ;;  %p2847_p3 = pneg %p3090_p11 }
  0x37   : > { %s2845_s7 = scalar_lea.hbm %s3097_s5, 192  ;;  %s2850_s16 = scalar_lea.hbm %s3232_s0, 384 }
  0x38   : > { %p2846_p0 = scmp.ne.s32.totalorder %s3097_s5, %s2845_s7  ;;  %p2851_p9 = scmp.lt.u32.totalorder %s3097_s5, %s3232_s0 }
  0x39   : > { %p2852_p1 = scmp.lt.u32.totalorder %s2850_s16, %s2845_s7  ;;  %p2854_p4 = scmp.lt.u32.totalorder %s2845_s7, %s3097_s5 }
  0x3a   : > { %p2848_p5 = pnand %p2847_p3, %p2846_p0 }
  0x3b   : > { %p2853_p2 = por %p2852_p1, %p2851_p9 }
  0x3c   : > { %p2849_p7 = pneg %p2848_p5 }
  0x3d   : > { %p2855_p6 = por %p2854_p4, %p2853_p2 }
  0x3f   : > { %p2856_p8 = pnand %p2855_p6, %p2849_p7 }
  0x41   : > { %2859 = shalt.err (!%p2856_p8)
}
  0x42   : > { %s2860_s24 = scalar_lea.vmem %s3099_s30, 192  ;;  %s2966_s23 = smov [#allocation2]  }
  0x43   : > { %p2861_p12 = scmp.ne.s32.totalorder %s3099_s30, %s2860_s24  ;;  %s2865_s29 = sshll.u32 %s2966_s23, 4  ;;  %s2866_s29 = int_to_ptr.vmem [resolvable:$false] %s2865_s29 }
  0x44   : > { %s2867_s4 = scalar_lea.vmem %s2866_s29, 384  ;;  %p2868_p5 = scmp.lt.s32.totalorder %s3099_s30, %s2866_s29 }
  0x45   : > { %p2863_p13 = pnand %p2861_p12, %p2847_p3  ;;  %p2869_p9 = scmp.lt.s32.totalorder %s2867_s4, %s2860_s24 }
  0x47   : > { %p2864_p0 = pneg %p2863_p13  ;;  %p2870_p1 = por %p2869_p9, %p2868_p5 }
  0x49   : > { %p2871_p2 = pnand %p2870_p1, %p2864_p0 }
  0x4b   : > { %2874 = shalt.err (!%p2871_p2)
}
  0x4c   : > { %2439 = dma.hbm_to_vmem [thread:$0]  (!%p3090_p11), %s3097_s5, 192, %s3099_s30, %s140_s6  }
  0x4d   : > { %p3248_p7 = scmp.ne.s32.totalorder %s3243_s21, 0 }
  0x4e   : > { %s3129_s18 = sand.u32 (!%p3248_p7), 1, %s2945_s10   ;;  %p3249_p3 = scmp.ne.s32.totalorder (!%p3248_p7), %s3241_s19, 0 }
  0x4f   : > { %162 = sbr.rel (%p3248_p7) target bundleno = 548 (0x224), region = 28  ;;  %s165_s8 = scalar_lea.sflag (!%p3248_p7), [#allocation3], %s3129_s18 }
  0x50   : > { %s2421_s7 = smul.u32 (!%p3248_p7), 12, %s3129_s18 }
  0x52   : > { %s3133_s15 = scalar_lea.vmem (!%p3248_p7), [#allocation2], %s2421_s7 }
  0x56   : > { %2928 = dma.done.wait (%p3249_p3), %s165_s8, 192  }
  0x57   : > { %2930 = vsyncadd (%p3249_p3), %s165_s8, 4294967104  ;;  %p3250_p11 = scmp.ne.s32.totalorder %s3239_s17, 0 }
  0x59   : > { %2932 = dma.done.wait (%p3250_p11), [#allocation6], 27648  }
  0x5a   : > { %2934 = vsyncadd (%p3250_p11), [#allocation6], 4294939648  ;;  %v2502_v0 = vld [vmem:[#allocation5 + $0x4] ss:$36 sps:$4 sm:$0xff]   ;;  %v2504_v1 = vld [vmem:[#allocation5 + $0xc] ss:$36 sps:$4 sm:$0xff]  }
  0x5b   : > { %1551 = vmatprep.subr.bf16.mxu0 %v2502_v0  ;;  %v2506_v2 = vld [vmem:[#allocation5] ss:$36 sps:$4 sm:$0xff]   ;;  %v2507_v3 = vld [vmem:[#allocation5 + $0x8] ss:$36 sps:$4 sm:$0xff]   ;;  %1633 = vmatprep.subr.bf16.mxu1 %v2504_v1  ;;  %v2510_v5 = vld [vmem:[#allocation5 + $0x54] ss:$36 sps:$4 sm:$0xff]  }
  0x5c   : > { %v2508_v4 = vld [vmem:[#allocation5 + $0x4c] ss:$36 sps:$4 sm:$0xff]   ;;  %1552 = vmatpush1.bf16.msra.mxu0 %v2506_v2  ;;  %1634 = vmatpush1.bf16.msra.mxu1 %v2507_v3  ;;  %v2514_v8 = vld [vmem:[#allocation5 + $0x94] ss:$36 sps:$4 sm:$0xff]   ;;  %v2516_v9 = vld [vmem:[#allocation5 + $0x9c] ss:$36 sps:$4 sm:$0xff]  }
  0x5d   : > { %v2512_v6 = vld [vmem:[#allocation5 + $0x48] ss:$36 sps:$4 sm:$0xff]   ;;  %1553 = vmatprep.subr.bf16.mxu0 %v2508_v4  ;;  %v2513_v7 = vld [vmem:[#allocation5 + $0x50] ss:$36 sps:$4 sm:$0xff]   ;;  %1635 = vmatprep.subr.bf16.mxu1 %v2510_v5  ;;  %v2519_v11 = vld [vmem:[#allocation5 + $0x98] ss:$36 sps:$4 sm:$0xff]  }
  0x5e   : > { %v2518_v10 = vld [vmem:[#allocation5 + $0x90] ss:$36 sps:$4 sm:$0xff]   ;;  %v2520_v12 = vld [vmem:[#allocation5 + $0xdc] ss:$36 sps:$4 sm:$0xff]   ;;  %v2522_v13 = vld [vmem:[#allocation5 + $0xe4] ss:$36 sps:$4 sm:$0xff]  }
  0x5f   : > { %v2524_v14 = vld [vmem:[#allocation5 + $0xd8] ss:$36 sps:$4 sm:$0xff]   ;;  %v2525_v15 = vld [vmem:[#allocation5 + $0xe0] ss:$36 sps:$4 sm:$0xff]   ;;  %v2528_v17 = vld [vmem:[#allocation5 + $0x12c] ss:$36 sps:$4 sm:$0xff]  }
  0x60   : > { %1554 = vmatpush1.bf16.msra.mxu0 %v2512_v6  ;;  %1636 = vmatpush1.bf16.msra.mxu1 %v2513_v7  ;;  %v2526_v16 = vld [vmem:[#allocation5 + $0x124] ss:$36 sps:$4 sm:$0xff]   ;;  %v2532_v20 = vld [vmem:[#allocation5 + $0x16c] ss:$36 sps:$4 sm:$0xff]   ;;  %v2534_v21 = vld [vmem:[#allocation5 + $0x174] ss:$36 sps:$4 sm:$0xff]  }
  0x61   : > { %1555 = vmatprep.subr.bf16.mxu0 %v2514_v8  ;;  %1637 = vmatprep.subr.bf16.mxu1 %v2516_v9  ;;  %v2530_v18 = vld [vmem:[#allocation5 + $0x120] ss:$36 sps:$4 sm:$0xff]   ;;  %v2531_v19 = vld [vmem:[#allocation5 + $0x128] ss:$36 sps:$4 sm:$0xff]   ;;  %v2537_v23 = vld [vmem:[#allocation5 + $0x170] ss:$36 sps:$4 sm:$0xff]  }
  0x62   : > { %v2536_v22 = vld [vmem:[#allocation5 + $0x168] ss:$36 sps:$4 sm:$0xff]   ;;  %v2538_v24 = vld [vmem:[#allocation5 + $0x1b4] ss:$36 sps:$4 sm:$0xff]   ;;  %v2540_v25 = vld [vmem:[#allocation5 + $0x1bc] ss:$36 sps:$4 sm:$0xff]  }
  0x63   : > { %v2542_v26 = vld [vmem:[#allocation5 + $0x1b0] ss:$36 sps:$4 sm:$0xff]   ;;  %v2543_v27 = vld [vmem:[#allocation5 + $0x1b8] ss:$36 sps:$4 sm:$0xff]   ;;  %v2546_v29 = vld [vmem:[#allocation5 + $0x204] ss:$36 sps:$4 sm:$0xff]  }
  0x64   : > { %1556 = vmatpush1.bf16.msra.mxu0 %v2518_v10  ;;  %1638 = vmatpush1.bf16.msra.mxu1 %v2519_v11  ;;  %v2544_v28 = vld [vmem:[#allocation5 + $0x1fc] ss:$36 sps:$4 sm:$0xff]   ;;  %v2550_v32 = vld [vmem:[#allocation5 + $0x244] ss:$36 sps:$4 sm:$0xff]   ;;  %v2552_v33 = vld [vmem:[#allocation5 + $0x24c] ss:$36 sps:$4 sm:$0xff]  }
  0x65   : > { %1557 = vmatprep.subr.bf16.mxu0 %v2520_v12  ;;  %1639 = vmatprep.subr.bf16.mxu1 %v2522_v13  ;;  %v2548_v30 = vld [vmem:[#allocation5 + $0x1f8] ss:$36 sps:$4 sm:$0xff]   ;;  %v2549_v31 = vld [vmem:[#allocation5 + $0x200] ss:$36 sps:$4 sm:$0xff]   ;;  %v2555_v35 = vld [vmem:[#allocation5 + $0x248] ss:$36 sps:$4 sm:$0xff]  }
  0x66   : > { %v2554_v34 = vld [vmem:[#allocation5 + $0x240] ss:$36 sps:$4 sm:$0xff]   ;;  %v2556_v36 = vld [vmem:[#allocation5 + $0x28c] ss:$36 sps:$4 sm:$0xff]   ;;  %v2558_v37 = vld [vmem:[#allocation5 + $0x294] ss:$36 sps:$4 sm:$0xff]  }
  0x67   : > { %v2560_v38 = vld [vmem:[#allocation5 + $0x288] ss:$36 sps:$4 sm:$0xff]   ;;  %v2561_v39 = vld [vmem:[#allocation5 + $0x290] ss:$36 sps:$4 sm:$0xff]   ;;  %v2564_v41 = vld [vmem:[#allocation5 + $0x2dc] ss:$36 sps:$4 sm:$0xff]  }
  0x68   : > { %1558 = vmatpush1.bf16.msra.mxu0 %v2524_v14  ;;  %1640 = vmatpush1.bf16.msra.mxu1 %v2525_v15  ;;  %v2562_v40 = vld [vmem:[#allocation5 + $0x2d4] ss:$36 sps:$4 sm:$0xff]   ;;  %v2568_v44 = vld [vmem:[#allocation5 + $0x31c] ss:$36 sps:$4 sm:$0xff]   ;;  %v2570_v45 = vld [vmem:[#allocation5 + $0x324] ss:$36 sps:$4 sm:$0xff]  }
  0x69   : > { %1559 = vmatprep.subr.bf16.mxu0 %v2526_v16  ;;  %1641 = vmatprep.subr.bf16.mxu1 %v2528_v17  ;;  %v2566_v42 = vld [vmem:[#allocation5 + $0x2d0] ss:$36 sps:$4 sm:$0xff]   ;;  %v2567_v43 = vld [vmem:[#allocation5 + $0x2d8] ss:$36 sps:$4 sm:$0xff]   ;;  %v2573_v49 = vld [vmem:[#allocation5 + $0x320] ss:$36 sps:$4 sm:$0xff]  }
  0x6a   : > { %v194_v46 = vld [vmem:[%s3133_s15] sm:$0xff]  ;;  %v2578_v52 = vld [vmem:[#allocation5 + $0x360] ss:$36 sps:$4 sm:$0xff]   ;;  %v2967_v13 = vmov 0   ;;  %vm2969_vm0 = vmmov 0   ;;  %s2422_s17 = smul.u32 36, %s3129_s18 }
  0x6b   : > { %v2572_v47 = vld [vmem:[#allocation5 + $0x318] ss:$36 sps:$4 sm:$0xff]   ;;  %v3144_v48 = vcombine.high %v194_v46, %v194_v46  ;;  %v2574_v50 = vld [vmem:[#allocation5 + $0x364] ss:$36 sps:$4 sm:$0xff]   ;;  %v2576_v51 = vld [vmem:[#allocation5 + $0x36c] ss:$36 sps:$4 sm:$0xff]   ;;  %v3148_v5 = vcombine.low %v194_v46, %v194_v46 }
  0x6c   : > { %1560 = vmatpush1.bf16.msra.mxu0 %v2530_v18  ;;  %1642 = vmatpush1.bf16.msra.mxu1 %v2531_v19  ;;  %v2579_v53 = vld [vmem:[#allocation5 + $0x368] ss:$36 sps:$4 sm:$0xff]   ;;  %v2582_v55 = vld [vmem:[#allocation5 + $0x3b4] ss:$36 sps:$4 sm:$0xff]   ;;  %v2588_v59 = vld [vmem:[#allocation5 + $0x3fc] ss:$36 sps:$4 sm:$0xff]  }
  0x6d   : > { %1561 = vmatprep.subr.bf16.mxu0 %v2532_v20  ;;  %1643 = vmatprep.subr.bf16.mxu1 %v2534_v21  ;;  %v2580_v54 = vld [vmem:[#allocation5 + $0x3ac] ss:$36 sps:$4 sm:$0xff]   ;;  %v2586_v58 = vld [vmem:[#allocation5 + $0x3f4] ss:$36 sps:$4 sm:$0xff]   ;;  %v2592_v62 = vld [vmem:[#allocation5 + $0x43c] ss:$36 sps:$4 sm:$0xff]  }
  0x6e   : > { %1583 = vmatprep.mubr.bf16.mxu0 %v3144_v48  ;;  %1665 = vmatprep.mubr.bf16.mxu1 %v3144_v48  ;;  %v2584_v56 = vld [vmem:[#allocation5 + $0x3a8] ss:$36 sps:$4 sm:$0xff]   ;;  %v2585_v57 = vld [vmem:[#allocation5 + $0x3b0] ss:$36 sps:$4 sm:$0xff]   ;;  %v2591_v61 = vld [vmem:[#allocation5 + $0x3f8] ss:$36 sps:$4 sm:$0xff]  }
  0x6f   : > { %v2590_v60 = vld [vmem:[#allocation5 + $0x3f0] ss:$36 sps:$4 sm:$0xff]   ;;  %v2594_v63 = vld [vmem:[#allocation5 + $0x444] ss:$36 sps:$4 sm:$0xff]   ;;  %v2596_v0 = vld [vmem:[#allocation5 + $0x438] ss:$36 sps:$4 sm:$0xff]  }
  0x70   : > { %1562 = vmatpush1.bf16.msra.mxu0 %v2536_v22  ;;  %1644 = vmatpush1.bf16.msra.mxu1 %v2537_v23  ;;  %v2597_v1 = vld [vmem:[#allocation5 + $0x440] ss:$36 sps:$4 sm:$0xff]   ;;  %v2604_v3 = vld [vmem:[#allocation5 + $0x48c] ss:$36 sps:$4 sm:$0xff]   ;;  %v2611_v8 = vld [vmem:[#allocation5 + $0x4d4] ss:$36 sps:$4 sm:$0xff]  }
  0x71   : > { %1563 = vmatprep.subr.bf16.mxu0 %v2538_v24  ;;  %1645 = vmatprep.subr.bf16.mxu1 %v2540_v25  ;;  %v2601_v2 = vld [vmem:[#allocation5 + $0x484] ss:$36 sps:$4 sm:$0xff]   ;;  %v2608_v7 = vld [vmem:[#allocation5 + $0x4cc] ss:$36 sps:$4 sm:$0xff]   ;;  %v2614_v11 = vld [vmem:[#allocation5 + $0x514] ss:$36 sps:$4 sm:$0xff]  }
  0x72   : > { %v2599_v4 = vld [vmem:[#allocation5 + $0x480] ss:$36 sps:$4 sm:$0xff]   ;;  %v2602_v6 = vld [vmem:[#allocation5 + $0x488] ss:$36 sps:$4 sm:$0xff]   ;;  %v2609_v10 = vld [vmem:[#allocation5 + $0x4d0] ss:$36 sps:$4 sm:$0xff]  }
  0x73   : > { %v2606_v9 = vld [vmem:[#allocation5 + $0x4c8] ss:$36 sps:$4 sm:$0xff]   ;;  %v2617_v12 = vld [vmem:[#allocation5 + $0x51c] ss:$36 sps:$4 sm:$0xff]   ;;  %v2612_v14 = vld [vmem:[#allocation5 + $0x510] ss:$36 sps:$4 sm:$0xff]  }
  0x74   : > { %1564 = vmatpush1.bf16.msra.mxu0 %v2542_v26  ;;  %1646 = vmatpush1.bf16.msra.mxu1 %v2543_v27  ;;  %v2615_v15 = vld [vmem:[#allocation5 + $0x518] ss:$36 sps:$4 sm:$0xff]   ;;  %v2623_v17 = vld [vmem:[#allocation5 + $0x564] ss:$36 sps:$4 sm:$0xff]   ;;  %v2629_v21 = vld [vmem:[#allocation5 + $0x5ac] ss:$36 sps:$4 sm:$0xff]  }
  0x75   : > { %1565 = vmatprep.subr.bf16.mxu0 %v2544_v28  ;;  %1647 = vmatprep.subr.bf16.mxu1 %v2546_v29  ;;  %v2620_v16 = vld [vmem:[#allocation5 + $0x55c] ss:$36 sps:$4 sm:$0xff]   ;;  %v2626_v20 = vld [vmem:[#allocation5 + $0x5a4] ss:$36 sps:$4 sm:$0xff]   ;;  %v2632_v24 = vld [vmem:[#allocation5 + $0x5ec] ss:$36 sps:$4 sm:$0xff]  }
  0x76   : > { %v2618_v18 = vld [vmem:[#allocation5 + $0x558] ss:$36 sps:$4 sm:$0xff]   ;;  %v2621_v19 = vld [vmem:[#allocation5 + $0x560] ss:$36 sps:$4 sm:$0xff]   ;;  %v2627_v23 = vld [vmem:[#allocation5 + $0x5a8] ss:$36 sps:$4 sm:$0xff]  }
  0x77   : > { %v2624_v22 = vld [vmem:[#allocation5 + $0x5a0] ss:$36 sps:$4 sm:$0xff]   ;;  %v2635_v25 = vld [vmem:[#allocation5 + $0x5f4] ss:$36 sps:$4 sm:$0xff]   ;;  %v2630_v26 = vld [vmem:[#allocation5 + $0x5e8] ss:$36 sps:$4 sm:$0xff]  }
  0x78   : > { %1566 = vmatpush1.bf16.msra.mxu0 %v2548_v30  ;;  %1648 = vmatpush1.bf16.msra.mxu1 %v2549_v31  ;;  %v2633_v27 = vld [vmem:[#allocation5 + $0x5f0] ss:$36 sps:$4 sm:$0xff]   ;;  %v2641_v29 = vld [vmem:[#allocation5 + $0x63c] ss:$36 sps:$4 sm:$0xff]   ;;  %s3171_s19 = scalar_lea.vmem [#allocation7], %s2422_s17  ;;  %s2423_s21 = smul.u32 576, %s2953_s12 }
  0x79   : > { %1567 = vmatprep.subr.bf16.mxu0 %v2550_v32  ;;  %1649 = vmatprep.subr.bf16.mxu1 %v2552_v33  ;;  %v2638_v28 = vld [vmem:[#allocation5 + $0x634] ss:$36 sps:$4 sm:$0xff]   ;;  %v2644_v32 = vld [vmem:[#allocation5 + $0x67c] ss:$36 sps:$4 sm:$0xff]   ;;  %v2647_v33 = vld [vmem:[#allocation5 + $0x684] ss:$36 sps:$4 sm:$0xff]  }
  0x7a   : > { %v2636_v30 = vld [vmem:[#allocation5 + $0x630] ss:$36 sps:$4 sm:$0xff]   ;;  %v2639_v31 = vld [vmem:[#allocation5 + $0x638] ss:$36 sps:$4 sm:$0xff]   ;;  %s2018_s30 = sshll.u32 %s3171_s19, 4  ;;  %s3182_s6 = scalar_lea.hbm %s3234_s2, %s2423_s21  ;;  %s3184_s30 = int_to_ptr.vmem [resolvable:$true] %s2018_s30 }
  0x7b   : > { %v2666_v46 = vld [vmem:[#allocation5 + $0xac] ss:$36 sps:$4 sm:$0xff]   ;;  %s2002_s16 = scalar_lea.sflag [#allocation4], %s3129_s18  ;;  %s2875_s26 = scalar_lea.vmem %s3184_s30, 576 }
  0x7c   : > { %1568 = vmatpush1.bf16.msra.mxu0 %v2554_v34  ;;  %1650 = vmatpush1.bf16.msra.mxu1 %v2555_v35  ;;  %v2642_v34 = vld [vmem:[#allocation5 + $0x678] ss:$36 sps:$4 sm:$0xff]   ;;  %v2645_v35 = vld [vmem:[#allocation5 + $0x680] ss:$36 sps:$4 sm:$0xff]   ;;  %p2876_p4 = scmp.ne.s32.totalorder %s3184_s30, %s2875_s26  ;;  %s2970_s12 = smov [#allocation7]  }
  0x7d   : > { %1569 = vmatprep.subr.bf16.mxu0 %v2556_v36  ;;  %1651 = vmatprep.subr.bf16.mxu1 %v2558_v37  ;;  %v2651_v36 = vld [vmem:[#allocation5 + $0x14] ss:$36 sps:$4 sm:$0xff]   ;;  %v2654_v37 = vld [vmem:[#allocation5 + $0x1c] ss:$36 sps:$4 sm:$0xff]   ;;  %s2879_s27 = sshll.u32 %s2970_s12, 4  ;;  %s2880_s27 = int_to_ptr.vmem [resolvable:$false] %s2879_s27 }
  0x7e   : > { %p2877_p6 = pnand %p2876_p4, %p3078_p10  ;;  %s2881_s24 = scalar_lea.vmem %s2880_s27, 1152 }
  0x7f   : > { %p2882_p12 = scmp.lt.s32.totalorder %s3184_s30, %s2880_s27  ;;  %p2883_p13 = scmp.lt.s32.totalorder %s2881_s24, %s2875_s26 }
  0x80   : > { %1570 = vmatpush1.bf16.msra.mxu0 %v2560_v38  ;;  %1652 = vmatpush1.bf16.msra.mxu1 %v2561_v39  ;;  %v3155_v38 = vld [vmem:[%s3133_s15 + $0x8] ss:$0 sps:$4 sm:$0xff]   ;;  %p2878_p8 = pneg %p2877_p6 }
  0x81   : > { %1571 = vmatprep.subr.bf16.mxu0 %v2562_v40  ;;  %1653 = vmatprep.subr.bf16.mxu1 %v2564_v41  ;;  %v2649_v39 = vld [vmem:[#allocation5 + $0x10] ss:$36 sps:$4 sm:$0xff]   ;;  %v2652_v40 = vld [vmem:[#allocation5 + $0x18] ss:$36 sps:$4 sm:$0xff]   ;;  %p2884_p0 = por %p2883_p13, %p2882_p12 }
  0x82   : > { %v2657_v41 = vld [vmem:[#allocation5 + $0x5c] ss:$36 sps:$4 sm:$0xff]  }
  0x83   : > { %p2885_p5 = pnand %p2884_p0, %p2878_p8 }
  0x84   : > { %1572 = vmatpush1.bf16.msra.mxu0 %v2566_v42  ;;  %1654 = vmatpush1.bf16.msra.mxu1 %v2567_v43  ;;  %v2660_v42 = vld [vmem:[#allocation5 + $0x64] ss:$36 sps:$4 sm:$0xff]   ;;  %v2655_v43 = vld [vmem:[#allocation5 + $0x58] ss:$36 sps:$4 sm:$0xff]  }
  0x85   : > { %1573 = vmatprep.subr.bf16.mxu0 %v2568_v44  ;;  %1655 = vmatprep.subr.bf16.mxu1 %v2570_v45  ;;  %v2658_v44 = vld [vmem:[#allocation5 + $0x60] ss:$36 sps:$4 sm:$0xff]  }
  0x86   : > { %v2663_v45 = vld [vmem:[#allocation5 + $0xa4] ss:$36 sps:$4 sm:$0xff]  }
  0x88   : > { %1574 = vmatpush1.bf16.msra.mxu0 %v2572_v47  ;;  %1656 = vmatpush1.bf16.msra.mxu1 %v2573_v49  ;;  %v2661_v47 = vld [vmem:[#allocation5 + $0xa0] ss:$36 sps:$4 sm:$0xff]   ;;  %v2664_v49 = vld [vmem:[#allocation5 + $0xa8] ss:$36 sps:$4 sm:$0xff]  }
  0x89   : > { %1575 = vmatprep.subr.bf16.mxu0 %v2574_v50  ;;  %1657 = vmatprep.subr.bf16.mxu1 %v2576_v51  ;;  %v2669_v50 = vld [vmem:[#allocation5 + $0xec] ss:$36 sps:$4 sm:$0xff]   ;;  %v2672_v51 = vld [vmem:[#allocation5 + $0xf4] ss:$36 sps:$4 sm:$0xff]  }
  0x8c   : > { %1576 = vmatpush1.bf16.msra.mxu0 %v2578_v52  ;;  %1658 = vmatpush1.bf16.msra.mxu1 %v2579_v53  ;;  %v2667_v52 = vld [vmem:[#allocation5 + $0xe8] ss:$36 sps:$4 sm:$0xff]   ;;  %v2670_v53 = vld [vmem:[#allocation5 + $0xf0] ss:$36 sps:$4 sm:$0xff]  }
  0x8d   : > { %1577 = vmatprep.subr.bf16.mxu0 %v2580_v54  ;;  %1659 = vmatprep.subr.bf16.mxu1 %v2582_v55  ;;  %v2675_v54 = vld [vmem:[#allocation5 + $0x134] ss:$36 sps:$4 sm:$0xff]   ;;  %v2678_v55 = vld [vmem:[#allocation5 + $0x13c] ss:$36 sps:$4 sm:$0xff]  }
  0x90   : > { %1578 = vmatpush1.bf16.msra.mxu0 %v2584_v56  ;;  %1660 = vmatpush1.bf16.msra.mxu1 %v2585_v57  ;;  %v2673_v56 = vld [vmem:[#allocation5 + $0x130] ss:$36 sps:$4 sm:$0xff]   ;;  %v2676_v57 = vld [vmem:[#allocation5 + $0x138] ss:$36 sps:$4 sm:$0xff]  }
  0x91   : > { %1579 = vmatprep.subr.bf16.mxu0 %v2586_v58  ;;  %1661 = vmatprep.subr.bf16.mxu1 %v2588_v59  ;;  %v2681_v58 = vld [vmem:[#allocation5 + $0x17c] ss:$36 sps:$4 sm:$0xff]   ;;  %v2684_v59 = vld [vmem:[#allocation5 + $0x184] ss:$36 sps:$4 sm:$0xff]  }
  0x94   : > { %1580 = vmatpush1.bf16.msra.mxu0 %v2590_v60  ;;  %1662 = vmatpush1.bf16.msra.mxu1 %v2591_v61  ;;  %v2679_v60 = vld [vmem:[#allocation5 + $0x178] ss:$36 sps:$4 sm:$0xff]   ;;  %v2682_v61 = vld [vmem:[#allocation5 + $0x180] ss:$36 sps:$4 sm:$0xff]  }
  0x95   : > { %1581 = vmatprep.subr.bf16.mxu0 %v2592_v62  ;;  %1663 = vmatprep.subr.bf16.mxu1 %v2594_v63  ;;  %v2687_v62 = vld [vmem:[#allocation5 + $0x1c4] ss:$36 sps:$4 sm:$0xff]   ;;  %v2690_v63 = vld [vmem:[#allocation5 + $0x1cc] ss:$36 sps:$4 sm:$0xff]  }
  0x98   : > { %1582 = vmatpush1.bf16.msra.mxu0 %v2596_v0  ;;  %1664 = vmatpush1.bf16.msra.mxu1 %v2597_v1  ;;  %v2685_v0 = vld [vmem:[#allocation5 + $0x1c0] ss:$36 sps:$4 sm:$0xff]   ;;  %v2688_v1 = vld [vmem:[#allocation5 + $0x1c8] ss:$36 sps:$4 sm:$0xff]  }
  0x99   : > { %1592 = vmatprep.subr.bf16.mxu0 %v2601_v2  ;;  %1674 = vmatprep.subr.bf16.mxu1 %v2604_v3  ;;  %v2693_v2 = vld [vmem:[#allocation5 + $0x20c] ss:$36 sps:$4 sm:$0xff]   ;;  %v2696_v3 = vld [vmem:[#allocation5 + $0x214] ss:$36 sps:$4 sm:$0xff]  }
  0x9b   : > { %1584 = vmatmul.mubr.bf16.vlgmr.msra.gmra.mrb[0].mxu0 %v3148_v5  ;;  %1666 = vmatmul.mubr.bf16.vlgmr.msra.gmra.mrb[0].mxu1 %v3148_v5 }
  0x9c   : > { %1593 = vmatpush1.bf16.msra.mxu0 %v2599_v4  ;;  %1675 = vmatpush1.bf16.msra.mxu1 %v2602_v6  ;;  %v2691_v4 = vld [vmem:[#allocation5 + $0x208] ss:$36 sps:$4 sm:$0xff]   ;;  %v2694_v6 = vld [vmem:[#allocation5 + $0x210] ss:$36 sps:$4 sm:$0xff]  }
  0x9d   : > { %1594 = vmatprep.subr.bf16.mxu0 %v2608_v7  ;;  %1676 = vmatprep.subr.bf16.mxu1 %v2611_v8  ;;  %v2699_v7 = vld [vmem:[#allocation5 + $0x254] ss:$36 sps:$4 sm:$0xff]   ;;  %v2702_v8 = vld [vmem:[#allocation5 + $0x25c] ss:$36 sps:$4 sm:$0xff]  }
  0x9e   : > { %1624 = vmatprep.mubr.bf16.mxu0 %v2967_v13  ;;  %1706 = vmatprep.mubr.bf16.mxu1 %v2967_v13 }
  0xa0   : > { %1595 = vmatpush1.bf16.msra.mxu0 %v2606_v9  ;;  %1677 = vmatpush1.bf16.msra.mxu1 %v2609_v10  ;;  %v2697_v9 = vld [vmem:[#allocation5 + $0x250] ss:$36 sps:$4 sm:$0xff]   ;;  %v2700_v10 = vld [vmem:[#allocation5 + $0x258] ss:$36 sps:$4 sm:$0xff]  }
  0xa1   : > { %1596 = vmatprep.subr.bf16.mxu0 %v2614_v11  ;;  %1678 = vmatprep.subr.bf16.mxu1 %v2617_v12  ;;  %v2705_v11 = vld [vmem:[#allocation5 + $0x29c] ss:$36 sps:$4 sm:$0xff]   ;;  %v2708_v12 = vld [vmem:[#allocation5 + $0x2a4] ss:$36 sps:$4 sm:$0xff]  }
  0xa4   : > { %1597 = vmatpush1.bf16.msra.mxu0 %v2612_v14  ;;  %1679 = vmatpush1.bf16.msra.mxu1 %v2615_v15  ;;  %v2703_v14 = vld [vmem:[#allocation5 + $0x298] ss:$36 sps:$4 sm:$0xff]   ;;  %v2706_v15 = vld [vmem:[#allocation5 + $0x2a0] ss:$36 sps:$4 sm:$0xff]  }
  0xa5   : > { %1598 = vmatprep.subr.bf16.mxu0 %v2620_v16  ;;  %1680 = vmatprep.subr.bf16.mxu1 %v2623_v17  ;;  %v2711_v16 = vld [vmem:[#allocation5 + $0x2e4] ss:$36 sps:$4 sm:$0xff]   ;;  %v2714_v17 = vld [vmem:[#allocation5 + $0x2ec] ss:$36 sps:$4 sm:$0xff]  }
  0xa8   : > { %1599 = vmatpush1.bf16.msra.mxu0 %v2618_v18  ;;  %1681 = vmatpush1.bf16.msra.mxu1 %v2621_v19  ;;  %v2709_v18 = vld [vmem:[#allocation5 + $0x2e0] ss:$36 sps:$4 sm:$0xff]   ;;  %v2712_v19 = vld [vmem:[#allocation5 + $0x2e8] ss:$36 sps:$4 sm:$0xff]  }
  0xa9   : > { %1600 = vmatprep.subr.bf16.mxu0 %v2626_v20  ;;  %1682 = vmatprep.subr.bf16.mxu1 %v2629_v21  ;;  %v2717_v20 = vld [vmem:[#allocation5 + $0x32c] ss:$36 sps:$4 sm:$0xff]   ;;  %v2720_v21 = vld [vmem:[#allocation5 + $0x334] ss:$36 sps:$4 sm:$0xff]  }
  0xac   : > { %1601 = vmatpush1.bf16.msra.mxu0 %v2624_v22  ;;  %1683 = vmatpush1.bf16.msra.mxu1 %v2627_v23  ;;  %v2715_v22 = vld [vmem:[#allocation5 + $0x328] ss:$36 sps:$4 sm:$0xff]   ;;  %v2718_v23 = vld [vmem:[#allocation5 + $0x330] ss:$36 sps:$4 sm:$0xff]  }
  0xad   : > { %1602 = vmatprep.subr.bf16.mxu0 %v2632_v24  ;;  %1684 = vmatprep.subr.bf16.mxu1 %v2635_v25  ;;  %v2723_v24 = vld [vmem:[#allocation5 + $0x374] ss:$36 sps:$4 sm:$0xff]   ;;  %v2726_v25 = vld [vmem:[#allocation5 + $0x37c] ss:$36 sps:$4 sm:$0xff]  }
  0xb0   : > { %1603 = vmatpush1.bf16.msra.mxu0 %v2630_v26  ;;  %1685 = vmatpush1.bf16.msra.mxu1 %v2633_v27  ;;  %v2721_v26 = vld [vmem:[#allocation5 + $0x370] ss:$36 sps:$4 sm:$0xff]   ;;  %v2724_v27 = vld [vmem:[#allocation5 + $0x378] ss:$36 sps:$4 sm:$0xff]  }
  0xb1   : > { %1604 = vmatprep.subr.bf16.mxu0 %v2638_v28  ;;  %1686 = vmatprep.subr.bf16.mxu1 %v2641_v29  ;;  %v2729_v28 = vld [vmem:[#allocation5 + $0x3bc] ss:$36 sps:$4 sm:$0xff]   ;;  %v2732_v29 = vld [vmem:[#allocation5 + $0x3c4] ss:$36 sps:$4 sm:$0xff]  }
  0xb4   : > { %1605 = vmatpush1.bf16.msra.mxu0 %v2636_v30  ;;  %1687 = vmatpush1.bf16.msra.mxu1 %v2639_v31  ;;  %v2727_v30 = vld [vmem:[#allocation5 + $0x3b8] ss:$36 sps:$4 sm:$0xff]   ;;  %v2730_v31 = vld [vmem:[#allocation5 + $0x3c0] ss:$36 sps:$4 sm:$0xff]  }
  0xb5   : > { %1606 = vmatprep.subr.bf16.mxu0 %v2644_v32  ;;  %1688 = vmatprep.subr.bf16.mxu1 %v2647_v33  ;;  %v2735_v32 = vld [vmem:[#allocation5 + $0x404] ss:$36 sps:$4 sm:$0xff]   ;;  %v2738_v33 = vld [vmem:[#allocation5 + $0x40c] ss:$36 sps:$4 sm:$0xff]  }
  0xb8   : > { %1607 = vmatpush1.bf16.msra.mxu0 %v2642_v34  ;;  %1689 = vmatpush1.bf16.msra.mxu1 %v2645_v35  ;;  %v2733_v34 = vld [vmem:[#allocation5 + $0x400] ss:$36 sps:$4 sm:$0xff]   ;;  %v2736_v35 = vld [vmem:[#allocation5 + $0x408] ss:$36 sps:$4 sm:$0xff]  }
  0xb9   : > { %1715 = vmatprep.subr.bf16.mxu0 %v2651_v36  ;;  %1797 = vmatprep.subr.bf16.mxu1 %v2654_v37  ;;  %v2741_v36 = vld [vmem:[#allocation5 + $0x44c] ss:$36 sps:$4 sm:$0xff]   ;;  %v2744_v37 = vld [vmem:[#allocation5 + $0x454] ss:$36 sps:$4 sm:$0xff]  }
  0xbb   : > { %1625 = vmatmul.mubr.bf16.vlgmr.msra.gmra.mrb[0].mxu0 %v3155_v38  ;;  %1707 = vmatmul.mubr.bf16.vlgmr.msra.gmra.mrb[0].mxu1 %v3155_v38 }
  0xbc   : > { %1716 = vmatpush1.bf16.msra.mxu0 %v2649_v39  ;;  %1798 = vmatpush1.bf16.msra.mxu1 %v2652_v40  ;;  %v2739_v39 = vld [vmem:[#allocation5 + $0x448] ss:$36 sps:$4 sm:$0xff]   ;;  %v2742_v40 = vld [vmem:[#allocation5 + $0x450] ss:$36 sps:$4 sm:$0xff]  }
  0xbd   : > { %1717 = vmatprep.subr.bf16.mxu0 %v2657_v41  ;;  %1799 = vmatprep.subr.bf16.mxu1 %v2660_v42  ;;  %v2747_v41 = vld [vmem:[#allocation5 + $0x494] ss:$36 sps:$4 sm:$0xff]   ;;  %v2750_v42 = vld [vmem:[#allocation5 + $0x49c] ss:$36 sps:$4 sm:$0xff]  }
  0xbe   : > { %1747 = vmatprep.mubr.bf16.mxu0 %v3144_v48  ;;  %1829 = vmatprep.mubr.bf16.mxu1 %v3144_v48 }
  0xc0   : > { %1718 = vmatpush1.bf16.msra.mxu0 %v2655_v43  ;;  %1800 = vmatpush1.bf16.msra.mxu1 %v2658_v44  ;;  %v2745_v43 = vld [vmem:[#allocation5 + $0x490] ss:$36 sps:$4 sm:$0xff]   ;;  %v2748_v44 = vld [vmem:[#allocation5 + $0x498] ss:$36 sps:$4 sm:$0xff]  }
  0xc1   : > { %1719 = vmatprep.subr.bf16.mxu0 %v2663_v45  ;;  %1801 = vmatprep.subr.bf16.mxu1 %v2666_v46  ;;  %v2753_v45 = vld [vmem:[#allocation5 + $0x4dc] ss:$36 sps:$4 sm:$0xff]   ;;  %v2756_v46 = vld [vmem:[#allocation5 + $0x4e4] ss:$36 sps:$4 sm:$0xff]  }
  0xc4   : > { %1720 = vmatpush1.bf16.msra.mxu0 %v2661_v47  ;;  %1802 = vmatpush1.bf16.msra.mxu1 %v2664_v49  ;;  %v2751_v47 = vld [vmem:[#allocation5 + $0x4d8] ss:$36 sps:$4 sm:$0xff]   ;;  %v2754_v49 = vld [vmem:[#allocation5 + $0x4e0] ss:$36 sps:$4 sm:$0xff]  }
  0xc5   : > { %1721 = vmatprep.subr.bf16.mxu0 %v2669_v50  ;;  %1803 = vmatprep.subr.bf16.mxu1 %v2672_v51  ;;  %v2759_v50 = vld [vmem:[#allocation5 + $0x524] ss:$36 sps:$4 sm:$0xff]   ;;  %v2762_v51 = vld [vmem:[#allocation5 + $0x52c] ss:$36 sps:$4 sm:$0xff]  }
  0xc8   : > { %1722 = vmatpush1.bf16.msra.mxu0 %v2667_v52  ;;  %1804 = vmatpush1.bf16.msra.mxu1 %v2670_v53  ;;  %v2757_v52 = vld [vmem:[#allocation5 + $0x520] ss:$36 sps:$4 sm:$0xff]   ;;  %v2760_v53 = vld [vmem:[#allocation5 + $0x528] ss:$36 sps:$4 sm:$0xff]  }
  0xc9   : > { %1723 = vmatprep.subr.bf16.mxu0 %v2675_v54  ;;  %1805 = vmatprep.subr.bf16.mxu1 %v2678_v55  ;;  %v2765_v54 = vld [vmem:[#allocation5 + $0x56c] ss:$36 sps:$4 sm:$0xff]   ;;  %v2768_v55 = vld [vmem:[#allocation5 + $0x574] ss:$36 sps:$4 sm:$0xff]  }
  0xcc   : > { %1724 = vmatpush1.bf16.msra.mxu0 %v2673_v56  ;;  %1806 = vmatpush1.bf16.msra.mxu1 %v2676_v57  ;;  %v2763_v56 = vld [vmem:[#allocation5 + $0x568] ss:$36 sps:$4 sm:$0xff]   ;;  %v2766_v57 = vld [vmem:[#allocation5 + $0x570] ss:$36 sps:$4 sm:$0xff]  }
  0xcd   : > { %1725 = vmatprep.subr.bf16.mxu0 %v2681_v58  ;;  %1807 = vmatprep.subr.bf16.mxu1 %v2684_v59  ;;  %v2771_v58 = vld [vmem:[#allocation5 + $0x5b4] ss:$36 sps:$4 sm:$0xff]   ;;  %v2774_v59 = vld [vmem:[#allocation5 + $0x5bc] ss:$36 sps:$4 sm:$0xff]  }
  0xd0   : > { %1726 = vmatpush1.bf16.msra.mxu0 %v2679_v60  ;;  %1808 = vmatpush1.bf16.msra.mxu1 %v2682_v61  ;;  %v2769_v60 = vld [vmem:[#allocation5 + $0x5b0] ss:$36 sps:$4 sm:$0xff]   ;;  %v2777_v61 = vld [vmem:[#allocation5 + $0x5fc] ss:$36 sps:$4 sm:$0xff]  }
  0xd1   : > { %1727 = vmatprep.subr.bf16.mxu0 %v2687_v62  ;;  %1809 = vmatprep.subr.bf16.mxu1 %v2690_v63  ;;  %v2780_v62 = vld [vmem:[#allocation5 + $0x604] ss:$36 sps:$4 sm:$0xff]   ;;  %v2775_v63 = vld [vmem:[#allocation5 + $0x5f8] ss:$36 sps:$4 sm:$0xff]  }
  0xd4   : > { %1728 = vmatpush1.bf16.msra.mxu0 %v2685_v0  ;;  %1810 = vmatpush1.bf16.msra.mxu1 %v2688_v1  ;;  %v2778_v0 = vld [vmem:[#allocation5 + $0x600] ss:$36 sps:$4 sm:$0xff]  }
  0xd5   : > { %1729 = vmatprep.subr.bf16.mxu0 %v2693_v2  ;;  %1811 = vmatprep.subr.bf16.mxu1 %v2696_v3  ;;  %v2783_v1 = vld [vmem:[#allocation5 + $0x644] ss:$36 sps:$4 sm:$0xff]   ;;  %v2786_v2 = vld [vmem:[#allocation5 + $0x64c] ss:$36 sps:$4 sm:$0xff]  }
  0xd6   : > { %v2781_v3 = vld [vmem:[#allocation5 + $0x640] ss:$36 sps:$4 sm:$0xff]  }
  0xd8   : > { %1730 = vmatpush1.bf16.msra.mxu0 %v2691_v4  ;;  %1812 = vmatpush1.bf16.msra.mxu1 %v2694_v6  ;;  %v2784_v4 = vld [vmem:[#allocation5 + $0x648] ss:$36 sps:$4 sm:$0xff]  }
  0xd9   : > { %1731 = vmatprep.subr.bf16.mxu0 %v2699_v7  ;;  %1813 = vmatprep.subr.bf16.mxu1 %v2702_v8  ;;  %v2789_v6 = vld [vmem:[#allocation5 + $0x68c] ss:$36 sps:$4 sm:$0xff]   ;;  %v2792_v7 = vld [vmem:[#allocation5 + $0x694] ss:$36 sps:$4 sm:$0xff]  }
  0xda   : > { %v2787_v8 = vld [vmem:[#allocation5 + $0x688] ss:$36 sps:$4 sm:$0xff]  }
  0xdc   : > { %1732 = vmatpush1.bf16.msra.mxu0 %v2697_v9  ;;  %1814 = vmatpush1.bf16.msra.mxu1 %v2700_v10  ;;  %v2790_v9 = vld [vmem:[#allocation5 + $0x690] ss:$36 sps:$4 sm:$0xff]   ;;  %v2793_v10 = vld [vmem:[#allocation5 + $0x260] ss:$36 sps:$4 sm:$0xff]  }
  0xdd   : > { %1733 = vmatprep.subr.bf16.mxu0 %v2705_v11  ;;  %1815 = vmatprep.subr.bf16.mxu1 %v2708_v12  ;;  %v2794_v11 = vld [vmem:[#allocation5 + $0x20] ss:$36 sps:$4 sm:$0xff]  }
  0xde   : > { %v2795_v12 = vld [vmem:[#allocation5 + $0x4a0] ss:$36 sps:$4 sm:$0xff]  }
  0xe0   : > { %1734 = vmatpush1.bf16.msra.mxu0 %v2703_v14  ;;  %1816 = vmatpush1.bf16.msra.mxu1 %v2706_v15  ;;  %v2968_v14 = vmov 0.0   ;;  %v2796_v15 = vld [vmem:[#allocation5 + $0x2a8] ss:$36 sps:$4 sm:$0xff]  }
  0xe1   : > { %1735 = vmatprep.subr.bf16.mxu0 %v2711_v16  ;;  %1817 = vmatprep.subr.bf16.mxu1 %v2714_v17  ;;  %v2797_v16 = vld [vmem:[#allocation5 + $0x68] ss:$36 sps:$4 sm:$0xff]  }
  0xe2   : > { %v2798_v17 = vld [vmem:[#allocation5 + $0x4e8] ss:$36 sps:$4 sm:$0xff]  }
  0xe4   : > { %1736 = vmatpush1.bf16.msra.mxu0 %v2709_v18  ;;  %1818 = vmatpush1.bf16.msra.mxu1 %v2712_v19  ;;  %v2799_v18 = vld [vmem:[#allocation5 + $0x2f0] ss:$36 sps:$4 sm:$0xff]  }
  0xe5   : > { %1737 = vmatprep.subr.bf16.mxu0 %v2717_v20  ;;  %1819 = vmatprep.subr.bf16.mxu1 %v2720_v21  ;;  %v2800_v19 = vld [vmem:[#allocation5 + $0xb0] ss:$36 sps:$4 sm:$0xff]   ;;  %v2802_v21 = vld [vmem:[#allocation5 + $0x338] ss:$36 sps:$4 sm:$0xff]  }
  0xe6   : > { %v2801_v20 = vld [vmem:[#allocation5 + $0x530] ss:$36 sps:$4 sm:$0xff]  }
  0xe8   : > { %1738 = vmatpush1.bf16.msra.mxu0 %v2715_v22  ;;  %1820 = vmatpush1.bf16.msra.mxu1 %v2718_v23  ;;  %v2803_v22 = vld [vmem:[#allocation5 + $0xf8] ss:$36 sps:$4 sm:$0xff]  }
  0xe9   : > { %1739 = vmatprep.subr.bf16.mxu0 %v2723_v24  ;;  %1821 = vmatprep.subr.bf16.mxu1 %v2726_v25  ;;  %v2804_v23 = vld [vmem:[#allocation5 + $0x578] ss:$36 sps:$4 sm:$0xff]   ;;  %v2805_v24 = vld [vmem:[#allocation5 + $0x380] ss:$36 sps:$4 sm:$0xff]  }
  0xea   : > { %v2806_v25 = vld [vmem:[#allocation5 + $0x140] ss:$36 sps:$4 sm:$0xff]  }
  0xec   : > { %1740 = vmatpush1.bf16.msra.mxu0 %v2721_v26  ;;  %1822 = vmatpush1.bf16.msra.mxu1 %v2724_v27  ;;  %v2808_v26 = vld [vmem:[#allocation5 + $0x3c8] ss:$36 sps:$4 sm:$0xff]  }
  0xed   : > { %1741 = vmatprep.subr.bf16.mxu0 %v2729_v28  ;;  %1823 = vmatprep.subr.bf16.mxu1 %v2732_v29  ;;  %v2809_v27 = vld [vmem:[#allocation5 + $0x188] ss:$36 sps:$4 sm:$0xff]   ;;  %v2811_v29 = vld [vmem:[#allocation5 + $0x410] ss:$36 sps:$4 sm:$0xff]  }
  0xee   : > { %v2810_v28 = vld [vmem:[#allocation5 + $0x608] ss:$36 sps:$4 sm:$0xff]  }
  0xf0   : > { %1742 = vmatpush1.bf16.msra.mxu0 %v2727_v30  ;;  %1824 = vmatpush1.bf16.msra.mxu1 %v2730_v31  ;;  %v2812_v30 = vld [vmem:[#allocation5 + $0x1d0] ss:$36 sps:$4 sm:$0xff]  }
  0xf1   : > { %1743 = vmatprep.subr.bf16.mxu0 %v2735_v32  ;;  %1825 = vmatprep.subr.bf16.mxu1 %v2738_v33  ;;  %v2813_v31 = vld [vmem:[#allocation5 + $0x650] ss:$36 sps:$4 sm:$0xff]   ;;  %v2814_v32 = vld [vmem:[#allocation5 + $0x458] ss:$36 sps:$4 sm:$0xff]  }
  0xf2   : > { %v2815_v33 = vld [vmem:[#allocation5 + $0x218] ss:$36 sps:$4 sm:$0xff]  }
  0xf4   : > { %1744 = vmatpush1.bf16.msra.mxu0 %v2733_v34  ;;  %1826 = vmatpush1.bf16.msra.mxu1 %v2736_v35  ;;  %v2816_v34 = vld [vmem:[#allocation5 + $0x698] ss:$36 sps:$4 sm:$0xff]  }
  0xf5   : > { %1745 = vmatprep.subr.bf16.mxu0 %v2741_v36  ;;  %1827 = vmatprep.subr.bf16.mxu1 %v2744_v37 }
  0xf8   : > { %1746 = vmatpush1.bf16.msra.mxu0 %v2739_v39  ;;  %1828 = vmatpush1.bf16.msra.mxu1 %v2742_v40 }
  0xf9   : > { %1756 = vmatprep.subr.bf16.mxu0 %v2747_v41  ;;  %1838 = vmatprep.subr.bf16.mxu1 %v2750_v42 }
  0xfb   : > { %1748 = vmatmul.mubr.bf16.vlgmr.msra.gmra.mrb[4].mxu0 %v3148_v5  ;;  %1830 = vmatmul.mubr.bf16.vlgmr.msra.gmra.mrb[4].mxu1 %v3148_v5 }
  0xfc   : > { %1757 = vmatpush1.bf16.msra.mxu0 %v2745_v43  ;;  %1839 = vmatpush1.bf16.msra.mxu1 %v2748_v44 }
  0xfd   : > { %1758 = vmatprep.subr.bf16.mxu0 %v2753_v45  ;;  %1840 = vmatprep.subr.bf16.mxu1 %v2756_v46 }
  0xfe   : > { %1788 = vmatprep.mubr.bf16.mxu0 %v2967_v13  ;;  %1870 = vmatprep.mubr.bf16.mxu1 %v2967_v13  ;;  %v2772_v13 = vld [vmem:[#allocation5 + $0x5b8] ss:$36 sps:$4 sm:$0xff]  }
 0x100   : > { %1759 = vmatpush1.bf16.msra.mxu0 %v2751_v47  ;;  %1841 = vmatpush1.bf16.msra.mxu1 %v2754_v49 }
 0x101   : > { %1760 = vmatprep.subr.bf16.mxu0 %v2759_v50  ;;  %1842 = vmatprep.subr.bf16.mxu1 %v2762_v51 }
 0x104   : > { %1761 = vmatpush1.bf16.msra.mxu0 %v2757_v52  ;;  %1843 = vmatpush1.bf16.msra.mxu1 %v2760_v53 }
 0x105   : > { %1762 = vmatprep.subr.bf16.mxu0 %v2765_v54  ;;  %1844 = vmatprep.subr.bf16.mxu1 %v2768_v55 }
 0x108   : > { %1763 = vmatpush1.bf16.msra.mxu0 %v2763_v56  ;;  %1845 = vmatpush1.bf16.msra.mxu1 %v2766_v57 }
 0x109   : > { %1764 = vmatprep.subr.bf16.mxu0 %v2771_v58  ;;  %1846 = vmatprep.subr.bf16.mxu1 %v2774_v59 }
 0x10c   : > { %1765 = vmatpush1.bf16.msra.mxu0 %v2769_v60  ;;  %1847 = vmatpush1.bf16.msra.mxu1 %v2772_v13 }
 0x10d   : > { %1766 = vmatprep.subr.bf16.mxu0 %v2777_v61  ;;  %1848 = vmatprep.subr.bf16.mxu1 %v2780_v62 }
 0x110   : > { %1767 = vmatpush1.bf16.msra.mxu0 %v2775_v63  ;;  %1849 = vmatpush1.bf16.msra.mxu1 %v2778_v0 }
 0x111   : > { %1768 = vmatprep.subr.bf16.mxu0 %v2783_v1  ;;  %1850 = vmatprep.subr.bf16.mxu1 %v2786_v2 }
 0x114   : > { %1769 = vmatpush1.bf16.msra.mxu0 %v2781_v3  ;;  %1851 = vmatpush1.bf16.msra.mxu1 %v2784_v4 }
 0x115   : > { %1770 = vmatprep.subr.bf16.mxu0 %v2789_v6  ;;  %1852 = vmatprep.subr.bf16.mxu1 %v2792_v7 }
 0x118   : > { %1771 = vmatpush1.bf16.msra.mxu0 %v2787_v8  ;;  %1853 = vmatpush1.bf16.msra.mxu1 %v2790_v9 }
 0x119   : > { %2352 = vmatprep.subr.bf16.mxu0 %v2793_v10  ;;  %2383 = vmatprep.subr.bf16.mxu1 %v2968_v14 }
 0x11b   : > { %1789 = vmatmul.mubr.bf16.vlgmr.msra.gmra.mrb[4].mxu0 %v3155_v38  ;;  %1871 = vmatmul.mubr.bf16.vlgmr.msra.gmra.mrb[4].mxu1 %v3155_v38 }
 0x11c   : > { %2353 = vmatpush3.bf16.msra.mxu0 %v2794_v11  ;;  %2384 = vmatpush3.bf16.msra.mxu1 %v2795_v12 }
 0x11d   : > { %2354 = vmatprep.subr.bf16.mxu0 %v2796_v15  ;;  %2385 = vmatprep.subr.bf16.mxu1 %v2968_v14 }
 0x11e   : > { %1911 = vmatprep.mubr.bf16.mxu0 %v3144_v48  ;;  %2399 = vmatprep.mubr.msk.bf16.mxu1 %vm2969_vm0, %v2968_v14  ;;  %v2807_v48 = vld [vmem:[#allocation5 + $0x5c0] ss:$36 sps:$4 sm:$0xff]  }
 0x120   : > { %2355 = vmatpush3.bf16.msra.mxu0 %v2797_v16  ;;  %2386 = vmatpush3.bf16.msra.mxu1 %v2798_v17 }
 0x121   : > { %2356 = vmatprep.subr.bf16.mxu0 %v2799_v18  ;;  %2387 = vmatprep.subr.bf16.mxu1 %v2968_v14 }
 0x124   : > { %2357 = vmatpush3.bf16.msra.mxu0 %v2800_v19  ;;  %2388 = vmatpush3.bf16.msra.mxu1 %v2801_v20 }
 0x125   : > { %2358 = vmatprep.subr.bf16.mxu0 %v2802_v21  ;;  %2389 = vmatprep.subr.bf16.mxu1 %v2968_v14 }
 0x128   : > { %2359 = vmatpush3.bf16.msra.mxu0 %v2803_v22  ;;  %2390 = vmatpush3.bf16.msra.mxu1 %v2804_v23 }
 0x129   : > { %2360 = vmatprep.subr.bf16.mxu0 %v2805_v24  ;;  %2391 = vmatprep.subr.bf16.mxu1 %v2968_v14 }
 0x12c   : > { %2361 = vmatpush3.bf16.msra.mxu0 %v2806_v25  ;;  %2392 = vmatpush3.bf16.msra.mxu1 %v2807_v48 }
 0x12d   : > { %2362 = vmatprep.subr.bf16.mxu0 %v2808_v26  ;;  %2393 = vmatprep.subr.bf16.mxu1 %v2968_v14 }
 0x130   : > { %2363 = vmatpush3.bf16.msra.mxu0 %v2809_v27  ;;  %2394 = vmatpush3.bf16.msra.mxu1 %v2810_v28 }
 0x131   : > { %2364 = vmatprep.subr.bf16.mxu0 %v2811_v29  ;;  %2395 = vmatprep.subr.bf16.mxu1 %v2968_v14 }
 0x134   : > { %2365 = vmatpush3.bf16.msra.mxu0 %v2812_v30  ;;  %2396 = vmatpush3.bf16.msra.mxu1 %v2813_v31 }
 0x135   : > { %2366 = vmatprep.subr.bf16.mxu0 %v2814_v32  ;;  %2397 = vmatprep.subr.bf16.mxu1 %v2968_v14 }
 0x138   : > { %2367 = vmatpush3.bf16.msra.mxu0 %v2815_v33  ;;  %2398 = vmatpush3.bf16.msra.mxu1 %v2816_v34 }
 0x13b   : > { %1912 = vmatmul.mubr.bf16.vlgmr.msra.gmra.mrb[8].mxu0 %v3148_v5  ;;  %2400 = vmatmul.mubr.bf16.vlgmr.msra.gmra.mrb[8].mxu1 %v3155_v38 }
 0x18e   : > { %v1626_v35 = vpop.f32.mrb[0].mxu0  ;;  %v1708_v36 = vpop.f32.mrb[0].mxu1 }
 0x18f   : > { %v1628_v37 = vpop.f32.mrb[1].mxu0  ;;  %v1710_v39 = vpop.f32.mrb[1].mxu1 }
 0x190   : > { %v2347_v40 = vpack.c.bf16 %v1628_v37, %v1626_v35  ;;  %v2348_v41 = vpack.c.bf16 %v1710_v39, %v1708_v36  ;;  %v1630_v42 = vpop.f32.mrb[2].mxu0  ;;  %v1712_v43 = vpop.f32.mrb[2].mxu1 }
 0x191   : > { %v1631_v44 = vpop.f32.mrb[3].mxu0  ;;  %v1713_v45 = vpop.f32.mrb[3].mxu1 }
 0x192   : > { %1996 = vst [vmem:[%s3171_s19] sm:$0xff] %v2347_v40  ;;  %1997 = vst [vmem:[%s3171_s19 + $0x8] sm:$0xff] %v2348_v41 }
 0x1ee   : > { %v1790_v5 = vpop.f32.mrb[4].mxu0  ;;  %v1872_v38 = vpop.f32.mrb[4].mxu1 }
 0x1ef   : > { %v1792_v46 = vpop.f32.mrb[5].mxu0  ;;  %v1874_v47 = vpop.f32.mrb[5].mxu1 }
 0x1f0   : > { %v2349_v49 = vpack.c.bf16 %v1792_v46, %v1790_v5  ;;  %v2350_v50 = vpack.c.bf16 %v1874_v47, %v1872_v38  ;;  %v1794_v51 = vpop.f32.mrb[6].mxu0  ;;  %v1876_v52 = vpop.f32.mrb[6].mxu1 }
 0x1f1   : > { %v1795_v53 = vpop.f32.mrb[7].mxu0  ;;  %v1877_v54 = vpop.f32.mrb[7].mxu1 }
 0x1f2   : > { %1998 = vst [vmem:[%s3171_s19 + $0x10] sm:$0xff] %v2349_v49  ;;  %1999 = vst [vmem:[%s3171_s19 + $0x18] sm:$0xff] %v2350_v50 }
 0x20e   : > { %v2368_v55 = vpop.f32.mrb[8].mxu0  ;;  %v1953_v56 = vpop.f32.mrb[8].mxu1 }
 0x20f   : > { %v2369_v57 = vpop.f32.mrb[9].mxu0  ;;  %v2401_v58 = vpop.f32.mrb[9].mxu1 }
 0x210   : > { %v2370_v59 = vadd.f32 %v2369_v57, %v2368_v55  ;;  %v2371_v60 = vpop.f32.mrb[10].mxu0  ;;  %v1956_v13 = vpop.f32.mrb[10].mxu1 }
 0x211   : > { %v2372_v61 = vpop.f32.mrb[11].mxu0  ;;  %v2402_v62 = vpop.f32.mrb[11].mxu1 }
 0x212   : > { %v1954_v63 = vadd.f32 %v2370_v59, %v1953_v56 }
 0x214   : > { %v2351_v0 = vpack.c.bf16 %v1954_v63, %v1954_v63 }
 0x216   : > { %2000 = vst [vmem:[%s3171_s19 + $0x20] sm:$0xf] %v2351_v0 }
 0x217   : > { %2888 = shalt.err (!%p2885_p5)
}
 0x218   : > { %s2889_s23 = scalar_lea.hbm %s3182_s6, 576  ;;  %s2893_s18 = scalar_lea.hbm %s3234_s2, 1152 }
 0x219   : > { %p2890_p9 = scmp.ne.s32.totalorder %s3182_s6, %s2889_s23  ;;  %p2894_p7 = scmp.lt.u32.totalorder %s3182_s6, %s3234_s2 }
 0x21a   : > { %p2895_p3 = scmp.lt.u32.totalorder %s2893_s18, %s2889_s23  ;;  %p2897_p4 = scmp.lt.u32.totalorder %s2889_s23, %s3182_s6 }
 0x21b   : > { %p2891_p1 = pnand %p2890_p9, %p3078_p10 }
 0x21c   : > { %p2896_p11 = por %p2895_p3, %p2894_p7 }
 0x21d   : > { %p2892_p2 = pneg %p2891_p1 }
 0x21e   : > { %p2898_p6 = por %p2897_p4, %p2896_p11 }
 0x220   : > { %p2899_p8 = pnand %p2898_p6, %p2892_p2 }
 0x222   : > { %2902 = shalt.err (!%p2899_p8)
}
 0x223   : > { %2430 = dma.vmem_to_hbm [thread:$0]  (%p3078_p10), %s3184_s30, 576, %s3182_s6, %s2002_s16  }
 0x224 PF: > { %s2030_s15 = sand.u32 1, %s2941_s9   ;;  %p3251_p12 = scmp.ne.s32.totalorder %s3242_s20, 0 }
 0x225   : > { %p3252_p13 = scmp.ge.s32.totalorder %s2961_s14, 2  ;;  %s2031_s17 = scalar_lea.sflag [#allocation4], %s2030_s15 }
 0x227   : > { %p2441_p0 = pnand %p3252_p13, %p3251_p12 }
 0x229   : > { %2936 = dma.done.wait (!%p2441_p0), %s2031_s17, 576  }
 0x22a   : > { %2938 = vsyncadd (!%p2441_p0), %s2031_s17, 4294966720  ;;  %s19_s14 = sadd.s32 1, %s2961_s14   ;;  %s3253_s9 = smov %s2945_s10 }
 0x22b   : > { %p16_p5 = scmp.ge.s32.totalorder %s19_s14, 4   ;;  %s3254_s10 = smov %s2949_s11 }
 0x22c   : > { %s3255_s11 = smov %s3087_s28  ;;  %s3256_s12 = smov %s2957_s13 }
 0x22d   : > { %s3257_s13 = smov %s3259_s25  ;;  %18 = sbr.rel (!%p16_p5) target bundleno = 7 (0x7), region = 77 }
 0x234   :  { %2036 = vsyncpa [#allocation3], 1 }
 0x235   :  { %2038 = vsyncpa [#allocation3 + $0x1], 1 }
 0x236   :  { %2039 = vsyncpa [#allocation6], 1 }
 0x237   :  { %2040 = vsyncpa [#allocation4], 1 }
 0x238   :  { %2042 = vsyncpa [#allocation4 + $0x1], 1 }

</bundles_post_ra>
